<compile_context>
chip_gen: v7x
topology: tpu7x:2x2x1
jax: 0.10.0
libtpu: 0.0.40
codegen_flags: <defaults>
</compile_context>

<pallas_src>
import functools

import numpy as np
import jax
import jax.numpy as jnp
from jax.experimental import pallas as pl
from jax.experimental.pallas import tpu as pltpu


# ---------------------------------------------------------------------------
# Kernels
# ---------------------------------------------------------------------------

def _matmul_kernel(goal_ref, x_ref, sel_ref, o_ref):
    # goal_ref : SMEM (1, 1) f32 scalar
    # x_ref    : VMEM (TR, W)      row tile x (windowed) feature columns
    # sel_ref  : VMEM (W, ny_out)  one-hot column-selection matrix
    # o_ref    : VMEM (TR, ny_out) gathered-and-shifted output tile
    g = goal_ref[0, 0]
    acc = jnp.dot(x_ref[...], sel_ref[...], preferred_element_type=jnp.float32)
    o_ref[...] = (acc - g).astype(o_ref.dtype)


def _make_slice_kernel(off, ny):
    # Contiguous-idx fast path: static lane slice + VPU subtract (no MXU, no
    # sel DMA).  `off`/`ny` are static Python ints baked into the kernel.
    def _slice_kernel(goal_ref, x_ref, o_ref):
        g = goal_ref[0, 0]
        v = x_ref[:, off:off + ny].astype(jnp.float32)
        o_ref[...] = (v - g).astype(o_ref.dtype)
    return _slice_kernel


# ---------------------------------------------------------------------------
# pallas_call wrappers (jitted; tiling parameters are static)
# ---------------------------------------------------------------------------

_VMEM_LIMIT = 48 * 1024 * 1024      # safe on v5e/v6e (128 MiB) and v7x (64 MiB)
_TILE_BUDGET = 24 * 1024 * 1024     # double-buffered in+out tiles stay under this


@functools.partial(jax.jit, static_argnames=("row_tile", "col_block"))
def _goalmap_call_matmul(goal, x2d, sel, *, row_tile, col_block):
    R, _ = x2d.shape
    W, ny_out = sel.shape
    grid = (pl.cdiv(R, row_tile),)
    return pl.pallas_call(
        _matmul_kernel,
        out_shape=jax.ShapeDtypeStruct((R, ny_out), x2d.dtype),
        grid=grid,
        in_specs=[
            pl.BlockSpec(memory_space=pltpu.SMEM),                 # goal scalar
            pl.BlockSpec((row_tile, W), lambda i: (i, col_block)),  # row tile of x
            pl.BlockSpec((W, ny_out), lambda i: (0, 0)),            # full sel block
        ],
        out_specs=pl.BlockSpec((row_tile, ny_out), lambda i: (i, 0)),
        compiler_params=pltpu.CompilerParams(
            dimension_semantics=("parallel",),
            vmem_limit_bytes=_VMEM_LIMIT,
        ),
    )(goal, x2d, sel)


@functools.partial(jax.jit,
                   static_argnames=("row_tile", "col_block", "width", "off", "ny"))
def _goalmap_call_slice(goal, x2d, *, row_tile, col_block, width, off, ny):
    R, _ = x2d.shape
    grid = (pl.cdiv(R, row_tile),)
    return pl.pallas_call(
        _make_slice_kernel(off, ny),
        out_shape=jax.ShapeDtypeStruct((R, ny), x2d.dtype),
        grid=grid,
        in_specs=[
            pl.BlockSpec(memory_space=pltpu.SMEM),
            pl.BlockSpec((row_tile, width), lambda i: (i, col_block)),
        ],
        out_specs=pl.BlockSpec((row_tile, ny), lambda i: (i, 0)),
        compiler_params=pltpu.CompilerParams(
            dimension_semantics=("parallel",),
            vmem_limit_bytes=_VMEM_LIMIT,
        ),
    )(goal, x2d)


# ---------------------------------------------------------------------------
# Module wrapper
# ---------------------------------------------------------------------------

class GoalMapPallas:
    """JAX/Pallas port of GoalMap: forward(x) = x[..., idx] - goal."""

    _MIN_KERNEL_BYTES = 1 << 20   # below this, plain XLA gather+sub is faster

    def __init__(self, idx=None, goal=0.0, learn_goal=False,
                 use_kernel="auto", max_rows_per_tile=None):
        self.idx = tuple(int(i) for i in idx) if idx is not None else None
        self.ny = len(self.idx) if self.idx is not None else None
        # goal kept as a (1,1) f32 device array, uploaded once.
        # TODO(synk): learn_goal=True stores goal as a replaceable array
        # attribute, not a trainable pytree parameter; hook it into your
        # optimizer externally if gradient flow through `goal` is required.
        self.learn_goal = learn_goal
        self.goal = jnp.full((1, 1), float(goal), dtype=jnp.float32)
        self.use_kernel = use_kernel
        self.max_rows_per_tile = max_rows_per_tile
        self._sel_cache = {}
        if self.idx is not None and self.ny > 0:
            self._contig = all(self.idx[j] == self.idx[0] + j
                               for j in range(self.ny))
        else:
            self._contig = False

    # ---- static helpers --------------------------------------------------

    def _column_window(self, D):
        """128-lane-aligned column window [lo, lo+W) covering all idx."""
        if D % 128 != 0:
            return 0, D
        lo = (min(self.idx) // 128) * 128
        hi = -(-(max(self.idx) + 1) // 128) * 128
        hi = min(hi, D)
        W = hi - lo
        if W <= 0 or W >= D:
            return 0, D
        if lo % W != 0:          # offset not expressible as a block index
            lo, W = 0, hi        # still drops the (D - hi) tail columns
            if W >= D:
                return 0, D
        return lo, W

    def _ny_out(self):
        ny = self.ny
        if ny >= 64 and ny % 128 != 0:
            return -(-ny // 128) * 128   # lane-dense (unmasked) stores
        return ny

    def _row_tile(self, R, W, ny_out, itemsize):
        per_row = 2 * W * itemsize + 2 * ny_out * itemsize  # double-buffered
        tr = _TILE_BUDGET // max(per_row, 1)
        tr = min(tr, 4096, R)
        if self.max_rows_per_tile is not None:
            tr = min(tr, self.max_rows_per_tile)
        if tr >= R:
            return int(R)                 # full dim: always legal
        return int(max(8, (tr // 8) * 8))  # sublane-aligned partial tile

    def _get_sel(self, col_start, W, ny_out, dtype):
        key = (col_start, W, ny_out, jnp.dtype(dtype).name)
        sel = self._sel_cache.get(key)
        if sel is None:
            sel_np = np.zeros((W, ny_out), dtype=np.float32)
            for j, i in enumerate(self.idx):
                sel_np[i - col_start, j] = 1.0
            sel = jax.device_put(jnp.asarray(sel_np, dtype=dtype))
            self._sel_cache[key] = sel
        return sel

    # ---- forward ---------------------------------------------------------

    def __call__(self, x):
        if self.idx is None:
            return x

        ny = self.ny
        lead = x.shape[:-1]
        D = x.shape[-1]

        small = (x.size * x.dtype.itemsize) < self._MIN_KERNEL_BYTES
        if self.use_kernel is False or (self.use_kernel == "auto" and small):
            # Tiny problem: Pallas dispatch overhead dominates; use plain XLA.
            idx_arr = jnp.asarray(self.idx, dtype=jnp.int32)
            g = self.goal[0, 0].astype(x.dtype)
            return jnp.take(x, idx_arr, axis=-1) - g

        x2d = x.reshape((-1, D))
        R = x2d.shape[0]
        col_start, W = self._column_window(D)
        col_block = col_start // W
        ny_out = self._ny_out()
        itemsize = jnp.dtype(x2d.dtype).itemsize
        row_tile = self._row_tile(R, W, ny_out, itemsize)

        if self._contig:
            out2d = _goalmap_call_slice(
                self.goal, x2d,
                row_tile=row_tile, col_block=col_block, width=W,
                off=self.idx[0] - col_start, ny=ny)
        else:
            sel = self._get_sel(col_start, W, ny_out, x2d.dtype)
            out2d = _goalmap_call_matmul(
                self.goal, x2d, sel, row_tile=row_tile, col_block=col_block)
            if ny_out != ny:
                out2d = out2d[:, :ny]

        return out2d.reshape(lead + (ny,))


# ---------------------------------------------------------------------------
# Demo / self-test
# ---------------------------------------------------------------------------

if __name__ == "__main__":
    key = jax.random.PRNGKey(0)
    goal = 0.5

    # --- 1. main test: scattered idx, f32, (batch=2, channels=4, seq=16, hidden=32)
    x = jax.random.normal(key, (2, 4, 16, 32), dtype=jnp.float32)
    idx = (0, 3, 5, 7, 10, 12, 13, 15)
    gm = GoalMapPallas(idx=list(idx), goal=goal, learn_goal=True, use_kernel=True)
    out = jax.block_until_ready(gm(x))
    ref = x[..., jnp.asarray(idx)] - jnp.float32(goal)
    assert out.shape == ref.shape, (out.shape, ref.shape)
    np.testing.assert_allclose(np.asarray(out), np.asarray(ref),
                               rtol=1e-6, atol=1e-6)

    # --- 2. same problem but force a multi-step row grid (exercises pipelining)
    gm_tiled = GoalMapPallas(idx=list(idx), goal=goal, use_kernel=True,
                             max_rows_per_tile=32)
    out_t = jax.block_until_ready(gm_tiled(x))
    np.testing.assert_allclose(np.asarray(out_t), np.asarray(ref),
                               rtol=1e-6, atol=1e-6)

    # --- 3. bf16 input: dtype is preserved, HBM traffic halved
    xb = x.astype(jnp.bfloat16)
    out_bf = jax.block_until_ready(gm(xb))
    assert out_bf.dtype == jnp.bfloat16, out_bf.dtype
    ref_bf = (xb.astype(jnp.float32)[..., jnp.asarray(idx)] - goal)
    np.testing.assert_allclose(np.asarray(out_bf).astype(np.float32),
                               np.asarray(ref_bf), rtol=2e-2, atol=2e-2)

    # --- 4. contiguous idx: slice fast path (no MXU / sel)
    x4 = jax.random.normal(jax.random.fold_in(key, 4), (2, 8, 32), jnp.float32)
    idx4 = tuple(range(4, 12))
    gm4 = GoalMapPallas(idx=list(idx4), goal=goal, use_kernel=True)
    out4 = jax.block_until_ready(gm4(x4))
    ref4 = x4[..., jnp.asarray(idx4)] - jnp.float32(goal)
    np.testing.assert_allclose(np.asarray(out4), np.asarray(ref4),
                               rtol=1e-6, atol=1e-6)

    # --- 5. clustered idx with D=256: column-window narrowing (loads 128 of 256 cols)
    x5 = jax.random.normal(jax.random.fold_in(key, 5), (4, 8, 256), jnp.float32)
    idx5 = (129, 133, 140, 150, 161, 190, 200, 255)
    gm5 = GoalMapPallas(idx=list(idx5), goal=goal, use_kernel=True)
    out5 = jax.block_until_ready(gm5(x5))
    ref5 = x5[..., jnp.asarray(idx5)] - jnp.float32(goal)
    np.testing.assert_allclose(np.asarray(out5), np.asarray(ref5),
                               rtol=1e-6, atol=1e-6)

    # --- 6. contiguous + windowed path
    x6 = jax.random.normal(jax.random.fold_in(key, 6), (2, 8, 256), jnp.float32)
    idx6 = tuple(range(130, 138))
    gm6 = GoalMapPallas(idx=list(idx6), goal=goal, use_kernel=True)
    out6 = jax.block_until_ready(gm6(x6))
    ref6 = x6[..., jnp.asarray(idx6)] - jnp.float32(goal)
    np.testing.assert_allclose(np.asarray(out6), np.asarray(ref6),
                               rtol=1e-6, atol=1e-6)

    # --- 7. idx=None identity path
    gm_id = GoalMapPallas(idx=None, goal=goal)
    out_id = jax.block_until_ready(gm_id(x))
    np.testing.assert_allclose(np.asarray(out_id), np.asarray(x))

    # --- 8. small-problem auto-bypass (plain XLA, no kernel)
    x8 = jax.random.normal(jax.random.fold_in(key, 8), (2, 4, 16), jnp.float32)
    gm8 = GoalMapPallas(idx=list(idx), goal=goal)       # use_kernel="auto"
    out8 = jax.block_until_ready(gm8(x8))
    ref8 = x8[..., jnp.asarray(idx)] - jnp.float32(goal)
    np.testing.assert_allclose(np.asarray(out8), np.asarray(ref8),
                               rtol=1e-6, atol=1e-6)

    print("KERNEL_OK")
</pallas_src>

<mosaic_0001>
module attributes {stable_mosaic.version = 11 : i64} {
  func.func @_matmul_kernel(%arg0: i32, %arg1: memref<1x1xf32, #tpu.memory_space<smem>>, %arg2: memref<128x32xf32, #tpu.memory_space<vmem>>, %arg3: memref<32x8xf32, #tpu.memory_space<vmem>>, %arg4: memref<128x8xf32, #tpu.memory_space<vmem>>) attributes {dimension_semantics = [#tpu.dimension_semantics<parallel>], iteration_bounds = array<i64: 1>, scalar_prefetch = 0 : i64, scratch_operands = 0 : i64, tpu.core_type = #tpu.core_type<tc>, window_params = [{transform_indices = @transform_0, window_bounds = array<i64: 1, 1>}, {transform_indices = @transform_1, window_bounds = array<i64: 128, 32>}, {pipeline_mode = #tpu.pipeline_mode<synchronous>, transform_indices = @transform_2, window_bounds = array<i64: 32, 8>}, {transform_indices = @transform_3, window_bounds = array<i64: 128, 8>}]} {
    %c0 = arith.constant 0 : index
    %c0_0 = arith.constant 0 : index
    %0 = memref.load %arg1[%c0, %c0_0] : memref<1x1xf32, #tpu.memory_space<smem>>
    %c0_1 = arith.constant 0 : index
    %c0_2 = arith.constant 0 : index
    %1 = vector.load %arg2[%c0_1, %c0_2] : memref<128x32xf32, #tpu.memory_space<vmem>>, vector<128x32xf32>
    %c0_3 = arith.constant 0 : index
    %c0_4 = arith.constant 0 : index
    %2 = vector.load %arg3[%c0_3, %c0_4] : memref<32x8xf32, #tpu.memory_space<vmem>>, vector<32x8xf32>
    %cst = arith.constant dense<0.000000e+00> : vector<128x8xf32>
    %3 = tpu.matmul %1, %2, %cst {dimension_numbers = #tpu.dot_dimension_numbers<[1], [0], [0], [1], [0, 0, 1, 1], [], []>} : vector<128x32xf32>, vector<32x8xf32>, vector<128x8xf32> -> vector<128x8xf32>
    %4 = vector.broadcast %0 : f32 to vector<128x8xf32>
    %5 = arith.subf %3, %4 : vector<128x8xf32>
    %c0_5 = arith.constant 0 : index
    %c0_6 = arith.constant 0 : index
    %6 = vector.load %arg4[%c0_5, %c0_6] : memref<128x8xf32, #tpu.memory_space<vmem>>, vector<128x8xf32>
    tpu.vector_store %arg4[%c0_5, %c0_6], %5 {strides = array<i32>} : memref<128x8xf32, #tpu.memory_space<vmem>>, vector<128x8xf32>,
    return
  }
  func.func @transform_0(%arg0: i32) -> (i32, i32) {
    %c0_i32 = arith.constant 0 : i32
    %c0_i32_0 = arith.constant 0 : i32
    %c0_i32_1 = arith.constant 0 : i32
    return %c0_i32, %c0_i32_0 : i32, i32
  }
  func.func @transform_1(%arg0: i32) -> (i32, i32) {
    %c0_i32 = arith.constant 0 : i32
    %c0_i32_0 = arith.constant 0 : i32
    return %arg0, %c0_i32 : i32, i32
  }
  func.func @transform_2(%arg0: i32) -> (i32, i32) {
    %c0_i32 = arith.constant 0 : i32
    %c0_i32_0 = arith.constant 0 : i32
    %c0_i32_1 = arith.constant 0 : i32
    return %c0_i32, %c0_i32_0 : i32, i32
  }
  func.func @transform_3(%arg0: i32) -> (i32, i32) {
    %c0_i32 = arith.constant 0 : i32
    %c0_i32_0 = arith.constant 0 : i32
    return %arg0, %c0_i32 : i32, i32
  }
}

</mosaic_0001>

<bundles_post_ra>
// kernel: _goalmap_call_matmul.1
= control target key start
LH: loop header
LB: loop body
LE: loop exit
PB: predicated region body
PF: predicated region fallthrough
CT: control target
= control target key end

     0   :  { %vm36_vm0 = vcmask 261120   ;;  %vm247_vm1 = vcmask 64512   ;;  %s511_s2 = inlined_call_operand.vmem [shape: f32[32,8], index: 2, kind: input, shape index: {}]   ;;  %s512_s1 = inlined_call_operand.vmem [shape: f32[128,32], index: 1, kind: input, shape index: {}]   ;;  %s513_s0 = inlined_call_operand.<no memory space> [shape: f32[1,1], index: 0, kind: input, shape index: {}]   ;;  %s514_s3 = inlined_call_operand.vmem [shape: f32[128,8], index: 3, kind: output, shape index: {}]  }
   0x1   :  { %v32_v0 = vld [vmem:[%s511_s2] sm:$0xff]  ;;  %v33_v1 = vld [vmem:[%s511_s2 + $0x8] sm:$0xff]  ;;  %v34_v2 = vld [vmem:[%s511_s2 + $0x10] sm:$0xff]  ;;  %v230_v22 = vstv %s513_s0 }
   0x2   :  { %v336_v3 = vpack.c.bf16 %v33_v1, %v32_v0  ;;  %v35_v4 = vld [vmem:[%s511_s2 + $0x18] sm:$0xff]  ;;  %v16_v5 = vld [vmem:[%s512_s1] sm:$0xff]  ;;  %v17_v8 = vld [vmem:[%s512_s1 + $0x8] sm:$0xff] }
   0x3   :  { %v24_v6 = vld [vmem:[%s512_s1 + $0x40] sm:$0xff]  ;;  %v340_v7 = vpack.c.bf16 %v35_v4, %v34_v2  ;;  %312 = vmatprep.mubr.msk.f32.mxu0 %vm36_vm0, %v16_v5  ;;  %v25_v9 = vld [vmem:[%s512_s1 + $0x48] sm:$0xff]  ;;  %v18_v10 = vld [vmem:[%s512_s1 + $0x10] sm:$0xff] }
   0x4   :  { %324 = vmatprep.mubr.msk.f32.mxu1 %vm36_vm0, %v24_v6  ;;  %337 = vmatprep.subr.bf16.mxu0 %v336_v3  ;;  %v26_v11 = vld [vmem:[%s512_s1 + $0x50] sm:$0xff]  ;;  %v19_v12 = vld [vmem:[%s512_s1 + $0x18] sm:$0xff]  ;;  %v20_v14 = vld [vmem:[%s512_s1 + $0x20] sm:$0xff] }
   0x5   :  { %344 = vmatprep.subr.bf16.mxu1 %v336_v3  ;;  %339 = vmatpush3.bf16.msra.mxu0 %v336_v3  ;;  %v27_v13 = vld [vmem:[%s512_s1 + $0x58] sm:$0xff]  ;;  %v28_v15 = vld [vmem:[%s512_s1 + $0x60] sm:$0xff]  ;;  %v21_v16 = vld [vmem:[%s512_s1 + $0x28] sm:$0xff] }
   0x6   :  { %346 = vmatpush3.bf16.msra.mxu1 %v336_v3  ;;  %341 = vmatprep.subr.bf16.mxu0 %v340_v7  ;;  %v29_v17 = vld [vmem:[%s512_s1 + $0x68] sm:$0xff]  ;;  %v22_v18 = vld [vmem:[%s512_s1 + $0x30] sm:$0xff]  ;;  %v23_v20 = vld [vmem:[%s512_s1 + $0x38] sm:$0xff] }
   0x7   :  { %345 = vmatprep.subr.bf16.mxu1 %v340_v7  ;;  %v30_v19 = vld [vmem:[%s512_s1 + $0x70] sm:$0xff]  ;;  %v31_v21 = vld [vmem:[%s512_s1 + $0x78] sm:$0xff] }
   0x9   :  { %343 = vmatpush3.bf16.msra.mxu0 %v340_v7 }
   0xa   :  { %347 = vmatpush3.bf16.msra.mxu1 %v340_v7 }
   0xc   :  { %313 = vmatmul.mubr.msk.f32.vlgmr.msra.gmra.mrb[0].mxu0 %vm36_vm0, %v17_v8 }
   0xd   :  { %325 = vmatmul.mubr.msk.f32.vlgmr.msra.gmra.mrb[0].mxu1 %vm36_vm0, %v25_v9  ;;  %315 = vmatprep.mubr.msk.f32.mxu0 %vm36_vm0, %v18_v10 }
   0xe   :  { %327 = vmatprep.mubr.msk.f32.mxu1 %vm36_vm0, %v26_v11 }
  0x10   :  { %316 = vmatmul.mubr.msk.f32.gmra.mrb[2].mxu0 %vm36_vm0, %v19_v12 }
  0x11   :  { %328 = vmatmul.mubr.msk.f32.gmra.mrb[2].mxu1 %vm36_vm0, %v27_v13  ;;  %318 = vmatprep.mubr.msk.f32.mxu0 %vm36_vm0, %v20_v14 }
  0x12   :  { %330 = vmatprep.mubr.msk.f32.mxu1 %vm36_vm0, %v28_v15 }
  0x14   :  { %319 = vmatmul.mubr.msk.f32.gmra.mrb[4].mxu0 %vm36_vm0, %v21_v16 }
  0x15   :  { %331 = vmatmul.mubr.msk.f32.gmra.mrb[4].mxu1 %vm36_vm0, %v29_v17  ;;  %321 = vmatprep.mubr.msk.f32.mxu0 %vm36_vm0, %v22_v18 }
  0x16   :  { %333 = vmatprep.mubr.msk.f32.mxu1 %vm36_vm0, %v30_v19 }
  0x18   :  { %322 = vmatmul.mubr.msk.f32.gmra.mrb[6].mxu0 %vm36_vm0, %v23_v20 }
  0x19   :  { %334 = vmatmul.mubr.msk.f32.gmra.mrb[6].mxu1 %vm36_vm0, %v31_v21 }
  0xdf   :  { %v314_v23 = vpop.f32.mrb[0].mxu0 }
  0xe0   :  { %v326_v24 = vpop.f32.mrb[0].mxu1  ;;  %v232_v25 = vsub.f32 %v314_v23, %v230_v22  ;;  %v151_v27 = vpop.f32.mrb[1].mxu0 }
  0xe1   :  { %v240_v26 = vsub.f32 %v326_v24, %v230_v22  ;;  %v191_v28 = vpop.f32.mrb[1].mxu1  ;;  %v231_v29 = vsub.f32 %v151_v27, %v230_v22 }
  0xe2   :  { %v239_v30 = vsub.f32 %v191_v28, %v230_v22  ;;  %249 = vst.msk [vmem:[%s514_s3 + $0x8] sm:$0xff] %vm247_vm1, %v232_v25 }
  0xe3   :  { %257 = vst.msk [vmem:[%s514_s3 + $0x48] sm:$0xff] %vm247_vm1, %v240_v26  ;;  %248 = vst.msk [vmem:[%s514_s3] sm:$0xff] %vm247_vm1, %v231_v29  ;;  %v317_v31 = vpop.f32.mrb[2].mxu0 }
  0xe4   :  { %256 = vst.msk [vmem:[%s514_s3 + $0x40] sm:$0xff] %vm247_vm1, %v239_v30  ;;  %v329_v32 = vpop.f32.mrb[2].mxu1  ;;  %v234_v33 = vsub.f32 %v317_v31, %v230_v22  ;;  %v161_v35 = vpop.f32.mrb[3].mxu0 }
  0xe5   :  { %v242_v34 = vsub.f32 %v329_v32, %v230_v22  ;;  %v201_v36 = vpop.f32.mrb[3].mxu1  ;;  %v233_v37 = vsub.f32 %v161_v35, %v230_v22 }
  0xe6   :  { %v241_v38 = vsub.f32 %v201_v36, %v230_v22  ;;  %251 = vst.msk [vmem:[%s514_s3 + $0x18] sm:$0xff] %vm247_vm1, %v234_v33 }
  0xe7   :  { %259 = vst.msk [vmem:[%s514_s3 + $0x58] sm:$0xff] %vm247_vm1, %v242_v34  ;;  %250 = vst.msk [vmem:[%s514_s3 + $0x10] sm:$0xff] %vm247_vm1, %v233_v37  ;;  %v320_v39 = vpop.f32.mrb[4].mxu0 }
  0xe8   :  { %258 = vst.msk [vmem:[%s514_s3 + $0x50] sm:$0xff] %vm247_vm1, %v241_v38  ;;  %v332_v40 = vpop.f32.mrb[4].mxu1  ;;  %v236_v41 = vsub.f32 %v320_v39, %v230_v22  ;;  %v171_v43 = vpop.f32.mrb[5].mxu0 }
  0xe9   :  { %v244_v42 = vsub.f32 %v332_v40, %v230_v22  ;;  %v211_v44 = vpop.f32.mrb[5].mxu1  ;;  %v235_v45 = vsub.f32 %v171_v43, %v230_v22 }
  0xea   :  { %v243_v46 = vsub.f32 %v211_v44, %v230_v22  ;;  %253 = vst.msk [vmem:[%s514_s3 + $0x28] sm:$0xff] %vm247_vm1, %v236_v41 }
  0xeb   :  { %261 = vst.msk [vmem:[%s514_s3 + $0x68] sm:$0xff] %vm247_vm1, %v244_v42  ;;  %252 = vst.msk [vmem:[%s514_s3 + $0x20] sm:$0xff] %vm247_vm1, %v235_v45  ;;  %v323_v47 = vpop.f32.mrb[6].mxu0 }
  0xec   :  { %260 = vst.msk [vmem:[%s514_s3 + $0x60] sm:$0xff] %vm247_vm1, %v243_v46  ;;  %v335_v48 = vpop.f32.mrb[6].mxu1  ;;  %v238_v49 = vsub.f32 %v323_v47, %v230_v22  ;;  %v181_v51 = vpop.f32.mrb[7].mxu0 }
  0xed   :  { %v246_v50 = vsub.f32 %v335_v48, %v230_v22  ;;  %v221_v52 = vpop.f32.mrb[7].mxu1  ;;  %v237_v53 = vsub.f32 %v181_v51, %v230_v22 }
  0xee   :  { %v245_v54 = vsub.f32 %v221_v52, %v230_v22  ;;  %255 = vst.msk [vmem:[%s514_s3 + $0x38] sm:$0xff] %vm247_vm1, %v238_v49 }
  0xef   :  { %263 = vst.msk [vmem:[%s514_s3 + $0x78] sm:$0xff] %vm247_vm1, %v246_v50  ;;  %254 = vst.msk [vmem:[%s514_s3 + $0x30] sm:$0xff] %vm247_vm1, %v237_v53 }
  0xf0   :  { %262 = vst.msk [vmem:[%s514_s3 + $0x70] sm:$0xff] %vm247_vm1, %v245_v54 }

</bundles_post_ra>
